<compile_context>
chip_gen: v7x
topology: tpu7x:2x2x1
jax: 0.10.0
libtpu: 0.0.40
codegen_flags: <defaults>
</compile_context>

<pallas_src>
import functools

import jax
import jax.numpy as jnp
from jax.experimental import pallas as pl
from jax.experimental.pallas import tpu as pltpu


def _r1_sumsq_kernel(g_ref, out_ref, *, block_rows, lanes):
    # g_ref  : VMEM (block_rows, lanes)  -- one streamed tile of the flattened gradient
    # out_ref: VMEM (8, lanes) f32       -- per-slice partial accumulator (resident
    #                                       across the reduction axis k)
    k = pl.program_id(1)

    @pl.when(k == 0)
    def _init():
        out_ref[...] = jnp.zeros_like(out_ref)

    g = g_ref[...].astype(jnp.float32)                     # bf16 -> f32 accumulate
    sq = g * g                                             # VPU
    # Fold the block down to the (8, lanes) accumulator: the reshape keeps the
    # native (8,128) tiling, so the axis-0 sum is pure vreg-wise VPU adds
    # (no XLU work in the steady-state loop).
    out_ref[...] += jnp.sum(sq.reshape(block_rows // 8, 8, lanes), axis=0)


def r1_regularization_pallas(grad_real, real_score, *, weight=1.0, reg_every=16):
    """weight/2 * reg_every * mean_b sum(grad^2) + 0*score[0]  (scalar)."""
    B = grad_real.shape[0]
    total = grad_real.size
    flat = grad_real.reshape(-1)          # keep native dtype (no f32 upcast for bf16)

    LANES = 1024                          # lane-dense last dim (multiple of 128)
    NUM_SLICES = 2                        # v7x: one slice per TensorCore ("parallel")

    # --- choose a streaming tile: <= 8 MiB (f32) per block, rows % 8 == 0 ---
    rows_needed = -(-total // LANES)
    rows_per_slice = -(-rows_needed // NUM_SLICES)
    max_block_rows = (8 * 1024 * 1024) // (LANES * 4)      # 2048 rows @ f32 = 8 MiB
    block_rows = min(max_block_rows, ((rows_per_slice + 7) // 8) * 8)
    block_rows = max(block_rows, 8)
    chunks_per_slice = -(-rows_per_slice // block_rows)
    rows_padded = NUM_SLICES * chunks_per_slice * block_rows

    pad = rows_padded * LANES - total
    if pad:
        flat = jnp.concatenate([flat, jnp.zeros((pad,), dtype=flat.dtype)])
    g2d = flat.reshape(rows_padded, LANES)

    partials = pl.pallas_call(
        functools.partial(_r1_sumsq_kernel, block_rows=block_rows, lanes=LANES),
        out_shape=jax.ShapeDtypeStruct((NUM_SLICES * 8, LANES), jnp.float32),
        grid_spec=pltpu.PrefetchScalarGridSpec(
            num_scalar_prefetch=0,
            grid=(NUM_SLICES, chunks_per_slice),
            in_specs=[
                pl.BlockSpec((block_rows, LANES),
                             lambda c, k: (c * chunks_per_slice + k, 0)),
            ],
            out_specs=pl.BlockSpec((8, LANES), lambda c, k: (c, 0)),
        ),
        compiler_params=pltpu.CompilerParams(
            dimension_semantics=("parallel", "arbitrary"),
            vmem_limit_bytes=32 * 1024 * 1024,
        ),
    )(g2d)

    # Tiny final combine (NUM_SLICES*8 x 1024 elements) + scaling in XLA.
    sum_sq = jnp.sum(partials)
    scale = jnp.float32(weight / 2.0 * reg_every) / jnp.float32(B)
    score0 = real_score.reshape(-1)[0].astype(jnp.float32)
    # "+ 0 * real_score[0]" kept for exact semantic fidelity (NaN/inf propagation).
    return scale * sum_sq + 0.0 * score0


# ----------------------------------------------------------------------------
# Glue: a tiny deterministic "discriminator" so that real_score depends on
# real_img and the R1 gradient is non-trivial. This stands in for the external
# discriminator whose autograd graph PyTorch would use.
# ----------------------------------------------------------------------------
def make_discriminator(key, img_shape):
    C, H, W = img_shape[1:]
    w = jax.random.normal(key, (C, H, W), dtype=jnp.float32) * 0.1

    def disc(img):
        # img: (B, C, H, W) -> score: (B,)
        return jnp.sum(jnp.tanh(img * w[None]), axis=(1, 2, 3))

    return disc


if __name__ == "__main__":
    key = jax.random.PRNGKey(0)
    k_img, k_w = jax.random.split(key)

    B, C, H, W = 2, 4, 16, 16
    real_img = jax.random.normal(k_img, (B, C, H, W), dtype=jnp.float32)

    disc = make_discriminator(k_w, (B, C, H, W))
    real_score = disc(real_img)                                   # (B,)

    # grad of sum(real_score) wrt real_img  (the autograd step of d_r1_loss)
    grad_real = jax.grad(lambda x: jnp.sum(disc(x)))(real_img)    # (B, C, H, W)

    weight, reg_every = 1.0, 16
    out = r1_regularization_pallas(grad_real, real_score,
                                   weight=weight, reg_every=reg_every)
    out = jax.block_until_ready(out)

    # Pure-JAX reference for correctness.
    ref_penalty = jnp.mean(jnp.sum(grad_real.reshape(B, -1) ** 2, axis=1))
    ref = weight / 2.0 * reg_every * ref_penalty + 0.0 * real_score[0]
    assert jnp.allclose(out, ref, rtol=1e-5, atol=1e-5), (out, ref)

    print("KERNEL_OK")
</pallas_src>

<mosaic_0001>
module attributes {stable_mosaic.version = 11 : i64} {
  func.func @_r1_sumsq_kernel(%arg0: i32, %arg1: i32, %arg2: memref<8x1024xf32, #tpu.memory_space<vmem>>, %arg3: memref<8x1024xf32, #tpu.memory_space<vmem>>) attributes {dimension_semantics = [#tpu.dimension_semantics<parallel>, #tpu.dimension_semantics<arbitrary>], iteration_bounds = array<i64: 2, 1>, scalar_prefetch = 0 : i64, scratch_operands = 0 : i64, tpu.core_type = #tpu.core_type<tc>, window_params = [{transform_indices = @transform_0, window_bounds = array<i64: 8, 1024>}, {transform_indices = @transform_1, window_bounds = array<i64: 8, 1024>}]} {
    %c0_i32 = arith.constant 0 : i32
    %0 = arith.cmpi eq, %arg1, %c0_i32 : i32
    %1 = arith.extui %0 : i1 to i32
    %c0_i32_0 = arith.constant 0 : i32
    %2 = arith.cmpi ne, %1, %c0_i32_0 : i32
    scf.if %2 {
      %cst_6 = arith.constant 0.000000e+00 : f32
      %10 = vector.broadcast %cst_6 : f32 to vector<8x1024xf32>
      %c0_7 = arith.constant 0 : index
      %c0_8 = arith.constant 0 : index
      %11 = vector.load %arg3[%c0_7, %c0_8] : memref<8x1024xf32, #tpu.memory_space<vmem>>, vector<8x1024xf32>
      tpu.vector_store %arg3[%c0_7, %c0_8], %10 {strides = array<i32>} : memref<8x1024xf32, #tpu.memory_space<vmem>>, vector<8x1024xf32>,
    } else {
    }
    %c0 = arith.constant 0 : index
    %c0_1 = arith.constant 0 : index
    %3 = vector.load %arg2[%c0, %c0_1] : memref<8x1024xf32, #tpu.memory_space<vmem>>, vector<8x1024xf32>
    %4 = arith.mulf %3, %3 : vector<8x1024xf32>
    %c0_2 = arith.constant 0 : index
    %c0_3 = arith.constant 0 : index
    %5 = vector.load %arg3[%c0_2, %c0_3] : memref<8x1024xf32, #tpu.memory_space<vmem>>, vector<8x1024xf32>
    %6 = vector.shape_cast %4 : vector<8x1024xf32> to vector<1x8x1024xf32>
    %cst = arith.constant dense<0.000000e+00> : vector<8x1024xf32>
    %7 = vector.multi_reduction <add>, %6, %cst [0] : vector<1x8x1024xf32> to vector<8x1024xf32>
    %8 = arith.addf %5, %7 : vector<8x1024xf32>
    %c0_4 = arith.constant 0 : index
    %c0_5 = arith.constant 0 : index
    %9 = vector.load %arg3[%c0_4, %c0_5] : memref<8x1024xf32, #tpu.memory_space<vmem>>, vector<8x1024xf32>
    tpu.vector_store %arg3[%c0_4, %c0_5], %8 {strides = array<i32>} : memref<8x1024xf32, #tpu.memory_space<vmem>>, vector<8x1024xf32>,
    return
  }
  func.func @transform_0(%arg0: i32, %arg1: i32) -> (i32, i32) {
    %c1_i32 = arith.constant 1 : i32
    %0 = arith.muli %arg0, %c1_i32 : i32
    %1 = arith.addi %0, %arg1 : i32
    %c0_i32 = arith.constant 0 : i32
    %c0_i32_0 = arith.constant 0 : i32
    return %1, %c0_i32 : i32, i32
  }
  func.func @transform_1(%arg0: i32, %arg1: i32) -> (i32, i32) {
    %c0_i32 = arith.constant 0 : i32
    %c0_i32_0 = arith.constant 0 : i32
    return %arg0, %c0_i32 : i32, i32
  }
}

</mosaic_0001>

<bundles_post_ra>
// kernel: tpu_custom_call.1
= control target key start
LH: loop header
LB: loop body
LE: loop exit
PB: predicated region body
PF: predicated region fallthrough
CT: control target
= control target key end

     0   :  { %6 = vsyncpa [#allocation3], 0  ;;  %s681_s0 = inlined_call_operand.hbm [shape: f32[16,1024], index: 0, kind: input, shape index: {}]   ;;  %s682_s1 = inlined_call_operand.hbm [shape: f32[16,1024], index: 1, kind: output, shape index: {}]  }
   0x1   :  { %8 = vsyncpa [#allocation3 + $0x1], 0 }
   0x2   :  { %9 = vsyncpa [#allocation4], 0 }
   0x3   :  { %11 = vsyncpa [#allocation4 + $0x1], 0  ;;  %s509_s6 = smov 0   ;;  %s511_s7 = smov 0  }
   0x4   :  { %s513_s8 = smov 0   ;;  %s515_s9 = smov 0  }
   0x5   :  { %s517_s10 = smov 0   ;;  %s519_s11 = smov 0  }
   0x6 LB: > { %s303_s12 = sadd.s32 4294967295, %s495_s11   ;;  %s304_s13 = sadd.s32 4294967294, %s495_s11   ;;  %s495_s11 = sphi %s519_s11, %s17_s11   ;;  %s491_s10 = sphi %s517_s10, %s698_s10   ;;  %s487_s9 = sphi %s515_s9, %s697_s9   ;;  %s483_s8 = sphi %s513_s8, %s696_s8   ;;  %s479_s7 = sphi %s511_s7, %s695_s7   ;;  %s475_s6 = sphi %s509_s6, %s694_s6  }
   0x7   : > { %s29_s14 = sadd.s32 1, %s491_s10  ;;  %s38_s15 = sadd.s32 1, %s483_s8 }
   0x8   : > { %p31_p0 = scmp.ge.s32.totalorder %s29_s14, 2  ;;  %p45_p1 = scmp.ne.s32.totalorder %s483_s8, %s479_s7 }
   0x9   : > { %p46_p2 = scmp.eq.s32.totalorder %s495_s11, 0  ;;  %p51_p3 = scmp.ne.s32.totalorder %s479_s7, %s475_s6 }
   0xa   : > { %s700_s14 = smov (%p31_p0, %s29_s14), 0  ;;  %p52_p5 = scmp.eq.s32.totalorder %s303_s12, 0 }
   0xb   : > { %p550_p4 = por %p46_p2, %p45_p1  ;;  %s35_s17 = ssub.s32 %s491_s10, %s700_s14 }
   0xc   : > { %p75_p6 = scmp.eq.s32.totalorder %s303_s12, 1  ;;  %p36_p7 = scmp.eq.s32.totalorder %s35_s17, 0 }
   0xd   : > { %p556_p8 = por %p52_p5, %p51_p3  ;;  %p81_p10 = scmp.eq.s32.totalorder %s304_s13, 1 }
   0xe   : > { %p560_p9 = por %p75_p6, %p45_p1  ;;  %p332_p13 = scmp.lt.s32.totalorder %s495_s11, 2 }
   0xf   : > { %s565_s20 = scalar_select %p36_p7, %s483_s8, %s38_s15  }
  0x10   : > { %s686_s19 = scalar_select %p560_p9, 1, 0 }
  0x11   : > { %p567_p11 = por %p81_p10, %p51_p3  ;;  %s101_s22 = sand.u32 1, %s483_s8  }
  0x12   : > { %s307_s23 = sshll.u32 %s101_s22, 6  ;;  %s318_s24 = sshll.u32 %s491_s10, 10 }
  0x13   : > { %s687_s21 = scalar_select %p567_p11, 1, 0 }
  0x14   : > { %s578_s27 = scalar_lea.hbm %s681_s0, %s318_s24  ;;  %s105_s28 = scalar_lea.vmem [#allocation2], %s307_s23 }
  0x15   : > { %s114_s29 = sshll.u32 %s105_s28, 4  ;;  %p584_p0 = pnand %p332_p13, %p550_p4  ;;  %s580_s29 = int_to_ptr.vmem [resolvable:$true] %s114_s29 }
  0x16   : > { %s102_s2 = scalar_lea.sflag [#allocation3], %s101_s22  ;;  %s383_s3 = scalar_lea.hbm %s578_s27, 1024 }
  0x17   : > { %p384_p3 = scmp.ne.s32.totalorder %s578_s27, %s383_s3  ;;  %p385_p5 = pneg %p584_p0 }
  0x18   : > { %s388_s12 = scalar_lea.hbm %s681_s0, 2048  ;;  %p389_p4 = scmp.lt.u32.totalorder %s578_s27, %s681_s0 }
  0x19   : > { %p386_p6 = pnand %p385_p5, %p384_p3  ;;  %p390_p10 = scmp.lt.u32.totalorder %s388_s12, %s383_s3 }
  0x1a   : > { %p392_p12 = scmp.lt.u32.totalorder %s383_s3, %s578_s27 }
  0x1b   : > { %p387_p7 = pneg %p386_p6  ;;  %p391_p13 = por %p390_p10, %p389_p4 }
  0x1d   : > { %p393_p1 = por %p392_p12, %p391_p13 }
  0x1f   : > { %p394_p2 = pnand %p393_p1, %p387_p7 }
  0x21   : > { %397 = shalt.err (!%p394_p2)
}
  0x22   : > { %s398_s16 = scalar_lea.vmem %s580_s29, 1024  ;;  %s497_s17 = smov [#allocation2]  }
  0x23   : > { %p399_p3 = scmp.ne.s32.totalorder %s580_s29, %s398_s16  ;;  %s403_s22 = sshll.u32 %s497_s17, 4  ;;  %s404_s22 = int_to_ptr.vmem [resolvable:$false] %s403_s22 }
  0x24   : > { %s405_s23 = scalar_lea.vmem %s404_s22, 2048  ;;  %p406_p9 = scmp.lt.s32.totalorder %s580_s29, %s404_s22 }
  0x25   : > { %p401_p6 = pnand %p399_p3, %p385_p5  ;;  %p407_p4 = scmp.lt.s32.totalorder %s405_s23, %s398_s16 }
  0x27   : > { %p402_p11 = pneg %p401_p6  ;;  %p408_p10 = por %p407_p4, %p406_p9 }
  0x29   : > { %p409_p12 = pnand %p408_p10, %p402_p11 }
  0x2b   : > { %412 = shalt.err (!%p409_p12)
}
  0x2c   : > { %327 = dma.hbm_to_vmem [thread:$0]  (!%p584_p0), %s578_s27, 1024, %s580_s29, %s102_s2  }
  0x2d   : > { %p689_p1 = scmp.lt.s32.totalorder %s495_s11, 3  ;;  %p690_p2 = scmp.ge.s32.totalorder %s495_s11, 1 }
  0x2f   : > { %p120_p5 = pnand %p690_p2, %p689_p1 }
  0x30   : > { %s620_s24 = sand.u32 (!%p120_p5), 1, %s479_s7  }
  0x31   : > { %123 = sbr.rel (%p120_p5) target bundleno = 83 (0x53), region = 24  ;;  %s311_s25 = sshll.u32 (!%p120_p5), %s620_s24, 6 }
  0x32   : > { %s126_s26 = scalar_lea.sflag (!%p120_p5), [#allocation3], %s620_s24  ;;  %s129_s28 = scalar_lea.vmem (!%p120_p5), [#allocation2], %s311_s25 }
  0x38   : > { %466 = dma.done.wait (%p556_p8), %s126_s26, 1024  }
  0x39   : > { %468 = vsyncadd (%p556_p8), %s126_s26, 4294966272  ;;  %v161_v0 = vld [vmem:[%s129_s28] sm:$0xff]  ;;  %v162_v1 = vld [vmem:[%s129_s28 + $0x8] sm:$0xff]  ;;  %s319_s27 = sshll.u32 %s487_s9, 10  ;;  %s147_s18 = scalar_lea.vmem [#allocation5], %s311_s25 }
  0x3a   : > { %v163_v2 = vld [vmem:[%s129_s28 + $0x10] sm:$0xff]  ;;  %v169_v3 = vmul.f32 %v161_v0, %v161_v0  ;;  %v170_v4 = vmul.f32 %v162_v1, %v162_v1  ;;  %v164_v6 = vld [vmem:[%s129_s28 + $0x18] sm:$0xff]  ;;  %v165_v7 = vld [vmem:[%s129_s28 + $0x20] sm:$0xff]  ;;  %s224_s29 = sshll.u32 %s147_s18, 4  ;;  %s632_s3 = scalar_lea.hbm %s682_s1, %s319_s27  ;;  %s634_s29 = int_to_ptr.vmem [resolvable:$true] %s224_s29 }
  0x3b   : > { %v171_v5 = vmul.f32 %v163_v2, %v163_v2  ;;  %v166_v8 = vld [vmem:[%s129_s28 + $0x28] sm:$0xff]  ;;  %v172_v9 = vmul.f32 %v164_v6, %v164_v6  ;;  %v173_v10 = vmul.f32 %v165_v7, %v165_v7  ;;  %v167_v12 = vld [vmem:[%s129_s28 + $0x30] sm:$0xff]  ;;  %v168_v13 = vld [vmem:[%s129_s28 + $0x38] sm:$0xff]  ;;  %s210_s9 = scalar_lea.sflag [#allocation4], %s620_s24  ;;  %s413_s4 = scalar_lea.vmem %s634_s29, 1024 }
  0x3c   : > { %v174_v11 = vmul.f32 %v166_v8, %v166_v8  ;;  %v175_v14 = vmul.f32 %v167_v12, %v167_v12  ;;  %v176_v15 = vmul.f32 %v168_v13, %v168_v13  ;;  %201 = vst [vmem:[%s147_s18] sm:$0xff] %v169_v3  ;;  %202 = vst [vmem:[%s147_s18 + $0x8] sm:$0xff] %v170_v4  ;;  %p414_p8 = scmp.ne.s32.totalorder %s634_s29, %s413_s4  ;;  %p691_p9 = scmp.ne.s32.totalorder %s686_s19, 0 }
  0x3d   : > { %203 = vst [vmem:[%s147_s18 + $0x10] sm:$0xff] %v171_v5  ;;  %204 = vst [vmem:[%s147_s18 + $0x18] sm:$0xff] %v172_v9  ;;  %s498_s5 = smov [#allocation5]  }
  0x3e   : > { %205 = vst [vmem:[%s147_s18 + $0x20] sm:$0xff] %v173_v10  ;;  %206 = vst [vmem:[%s147_s18 + $0x28] sm:$0xff] %v174_v11  ;;  %p415_p11 = pnand %p414_p8, %p691_p9  ;;  %s417_s12 = sshll.u32 %s498_s5, 4  ;;  %s418_s12 = int_to_ptr.vmem [resolvable:$false] %s417_s12 }
  0x3f   : > { %207 = vst [vmem:[%s147_s18 + $0x30] sm:$0xff] %v175_v14  ;;  %208 = vst [vmem:[%s147_s18 + $0x38] sm:$0xff] %v176_v15  ;;  %s419_s13 = scalar_lea.vmem %s418_s12, 2048  ;;  %p420_p7 = scmp.lt.s32.totalorder %s634_s29, %s418_s12 }
  0x40   : > { %p416_p0 = pneg %p415_p11  ;;  %p421_p13 = scmp.lt.s32.totalorder %s419_s13, %s413_s4 }
  0x42   : > { %p422_p3 = por %p421_p13, %p420_p7 }
  0x44   : > { %p423_p6 = pnand %p422_p3, %p416_p0 }
  0x46   : > { %426 = shalt.err (!%p423_p6)
}
  0x47   : > { %s427_s15 = scalar_lea.hbm %s632_s3, 1024  ;;  %s431_s22 = scalar_lea.hbm %s682_s1, 2048 }
  0x48   : > { %p428_p4 = scmp.ne.s32.totalorder %s632_s3, %s427_s15  ;;  %p432_p1 = scmp.lt.u32.totalorder %s632_s3, %s682_s1 }
  0x49   : > { %p433_p2 = scmp.lt.u32.totalorder %s431_s22, %s427_s15  ;;  %p435_p8 = scmp.lt.u32.totalorder %s427_s15, %s632_s3 }
  0x4a   : > { %p429_p10 = pnand %p428_p4, %p691_p9 }
  0x4b   : > { %p434_p5 = por %p433_p2, %p432_p1 }
  0x4c   : > { %p430_p12 = pneg %p429_p10 }
  0x4d   : > { %p436_p11 = por %p435_p8, %p434_p5 }
  0x4f   : > { %p437_p0 = pnand %p436_p11, %p430_p12 }
  0x51   : > { %440 = shalt.err (!%p437_p0)
}
  0x52   : > { %322 = dma.vmem_to_hbm [thread:$0]  (%p691_p9), %s634_s29, 1024, %s632_s3, %s210_s9  }
  0x53 PF: > { %s236_s25 = sand.u32 1, %s475_s6   ;;  %p692_p7 = scmp.ne.s32.totalorder %s687_s21, 0 }
  0x54   : > { %p693_p13 = scmp.ge.s32.totalorder %s495_s11, 2  ;;  %s237_s26 = scalar_lea.sflag [#allocation4], %s236_s25 }
  0x56   : > { %p329_p3 = pnand %p693_p13, %p692_p7 }
  0x58   : > { %470 = dma.done.wait (!%p329_p3), %s237_s26, 1024  }
  0x59   : > { %472 = vsyncadd (!%p329_p3), %s237_s26, 4294966272  ;;  %s17_s11 = sadd.s32 1, %s495_s11   ;;  %s694_s6 = smov %s479_s7 }
  0x5a   : > { %p14_p6 = scmp.ge.s32.totalorder %s17_s11, 4   ;;  %s695_s7 = smov %s483_s8 }
  0x5b   : > { %s696_s8 = smov %s565_s20  ;;  %s697_s9 = smov %s491_s10 }
  0x5c   : > { %s698_s10 = smov %s700_s14  ;;  %16 = sbr.rel (!%p14_p6) target bundleno = 6 (0x6), region = 73 }
  0x63   :  { %242 = vsyncpa [#allocation3], 1 }
  0x64   :  { %244 = vsyncpa [#allocation3 + $0x1], 1 }
  0x65   :  { %245 = vsyncpa [#allocation4], 1 }
  0x66   :  { %247 = vsyncpa [#allocation4 + $0x1], 1 }

</bundles_post_ra>
